<compile_context>
chip_gen: v7x
topology: tpu7x:2x2x1
jax: 0.10.0
libtpu: 0.0.40
codegen_flags: <defaults>
</compile_context>

<pallas_src>
import jax
import jax.numpy as jnp
from jax.experimental import pallas as pl
from jax.experimental.pallas import tpu as pltpu


# Contract lhs dim 1 with rhs dim 1 (A @ B^T) without materializing a transpose.
_NT_DIMS = (((1,), (1,)), ((), ()))


def _mlp_mu_t(x_ref, w1_ref, b1_ref, w2_ref, b2_ref, w3_ref, b3_ref):
    """Feature-major MLP body: returns mu^T of shape (out, tb).

    Weights are in native PyTorch layout (out_features, in_features); biases
    are stored (out_features, 1) so they lane-broadcast over the batch tile.
    """
    x = x_ref[...]                                          # (tb, in)
    # layer 1: (h1, in) x (tb, in)^T -> (h1, tb)
    h = jax.lax.dot_general(w1_ref[...], x, _NT_DIMS,
                            preferred_element_type=jnp.float32) + b1_ref[...]
    h = jnp.tanh(h)
    # layer 2: (h2, h1) @ (h1, tb) -> (h2, tb)
    h = jnp.dot(w2_ref[...], h, preferred_element_type=jnp.float32) + b2_ref[...]
    h = jnp.tanh(h)
    # output layer (identity activation): (out, h2) @ (h2, tb) -> (out, tb)
    mu_t = jnp.dot(w3_ref[...], h, preferred_element_type=jnp.float32) + b3_ref[...]
    return mu_t


def _gaussian_policy_kernel_eps(x_ref, eps_ref, w1_ref, b1_ref, w2_ref, b2_ref,
                                w3_ref, b3_ref, out_ref):
    out_n = out_ref.shape[0] // 2
    mu_t = _mlp_mu_t(x_ref, w1_ref, b1_ref, w2_ref, b2_ref, w3_ref, b3_ref)
    # Two aligned, lane-dense sublane-range stores: [mu ; mu + eps].
    out_ref[0:out_n, :] = mu_t.astype(out_ref.dtype)
    out_ref[out_n:, :] = (mu_t + eps_ref[...]).astype(out_ref.dtype)


def _gaussian_policy_kernel_rng(seed_ref, x_ref, w1_ref, b1_ref, w2_ref, b2_ref,
                                w3_ref, b3_ref, out_ref):
    out_n = out_ref.shape[0] // 2
    tb = out_ref.shape[1]
    pltpu.prng_seed(seed_ref[0] + pl.program_id(0))         # distinct stream per tile
    mu_t = _mlp_mu_t(x_ref, w1_ref, b1_ref, w2_ref, b2_ref, w3_ref, b3_ref)
    eps_t = pltpu.stateful_normal((out_n, tb), jnp.float32)
    out_ref[0:out_n, :] = mu_t.astype(out_ref.dtype)
    out_ref[out_n:, :] = (mu_t + eps_t).astype(out_ref.dtype)


def _cdiv(a, b):
    return -(-a // b)


def _round_up(n, m):
    return ((n + m - 1) // m) * m


def gaussian_policy_forward(x, params, eps=None, *, seed=0, block_b=1024):
    """Fused MLP + Gaussian sampling.

    x:      (B, input_size) float32
    params: (w1, b1, w2, b2, w3, b3), w_i (out, in) PyTorch layout, b_i (out, 1)
    eps:    optional (B, output_size) float32 N(0,1) noise.  If None, noise is
            generated in-kernel (requires pltpu.stateful_normal).
    Returns (mu, std, pi), each (B, output_size) float32.  std == 1 exactly.
    """
    w1, b1, w2, b2, w3, b3 = params
    B, in_size = x.shape
    out_size = w3.shape[0]

    # --- balanced, 128-lane-aligned batch tiling with minimal padding --------
    b_aligned = _round_up(B, 128)
    num_tiles = _cdiv(b_aligned, block_b)
    if num_tiles == 1 and b_aligned >= 256:
        num_tiles = 2          # >= 2 grid steps so "parallel" can use both v7x TCs
    tb = _round_up(_cdiv(b_aligned, num_tiles), 128)
    b_padded = num_tiles * tb

    if b_padded != B:
        x = jnp.pad(x, ((0, b_padded - B), (0, 0)))

    use_rng = eps is None
    if use_rng and not hasattr(pltpu, "stateful_normal"):
        raise NotImplementedError(
            "in-kernel noise needs pltpu.stateful_normal; pass eps explicitly")
    if not use_rng:
        eps_t = eps.T                                       # (out, B): lane-dense stream
        if b_padded != B:
            eps_t = jnp.pad(eps_t, ((0, 0), (0, b_padded - B)))

    out_shape = jax.ShapeDtypeStruct((2 * out_size, b_padded), jnp.float32)
    h1, h2 = w1.shape[0], w2.shape[0]
    cost = pl.CostEstimate(
        flops=2 * b_padded * (in_size * h1 + h1 * h2 + h2 * out_size),
        transcendentals=b_padded * (h1 + h2),
        bytes_accessed=4 * (b_padded * (in_size + 2 * out_size
                                        + (0 if use_rng else out_size))
                            + sum(int(p.size) for p in params)),
    )
    cparams = pltpu.CompilerParams(dimension_semantics=("parallel",))
    weights = (w1, b1, w2, b2, w3, b3)

    if use_rng:
        # Seed goes in via scalar prefetch (SMEM); index_maps get it as a
        # trailing positional arg.
        grid_spec = pltpu.PrefetchScalarGridSpec(
            num_scalar_prefetch=1,
            grid=(num_tiles,),
            in_specs=[pl.BlockSpec((tb, in_size), lambda i, s: (i, 0))]
                     + [pl.BlockSpec(p.shape, lambda i, s: (0, 0)) for p in weights],
            out_specs=pl.BlockSpec((2 * out_size, tb), lambda i, s: (0, i)),
        )
        fused_t = pl.pallas_call(
            _gaussian_policy_kernel_rng,
            out_shape=out_shape,
            grid_spec=grid_spec,
            compiler_params=cparams,
            cost_estimate=cost,
        )(jnp.asarray([seed], dtype=jnp.int32), x, *weights)
    else:
        fused_t = pl.pallas_call(
            _gaussian_policy_kernel_eps,
            out_shape=out_shape,
            grid=(num_tiles,),
            in_specs=[pl.BlockSpec((tb, in_size), lambda i: (i, 0)),
                      pl.BlockSpec((out_size, tb), lambda i: (0, i))]
                     + [pl.BlockSpec(p.shape, lambda i: (0, 0)) for p in weights],
            out_specs=pl.BlockSpec((2 * out_size, tb), lambda i: (0, i)),
            compiler_params=cparams,
            cost_estimate=cost,
        )(x, eps_t, *weights)

    # Layout plumbing back to the (B, out) API; std = exp(0) == 1 exactly.
    mu = fused_t[:out_size, :B].T
    pi = fused_t[out_size:, :B].T
    std = jnp.ones_like(mu)
    return mu, std, pi


def init_params(key, input_size, output_size, hidden_sizes=(64, 64)):
    """Deterministic synthetic init, native PyTorch nn.Linear layout (out, in)."""
    sizes = (input_size,) + tuple(hidden_sizes) + (output_size,)
    params = []
    keys = jax.random.split(key, len(sizes) - 1)
    for k, fan_in, fan_out in zip(keys, sizes[:-1], sizes[1:]):
        kw, kb = jax.random.split(k)
        bound = float(fan_in) ** -0.5
        w = jax.random.uniform(kw, (fan_out, fan_in), jnp.float32, -bound, bound)
        # bias kept (out, 1) so it lane-broadcasts over the batch inside the kernel
        b = jax.random.uniform(kb, (fan_out, 1), jnp.float32, -bound, bound)
        params.extend([w, b])
    return tuple(params)


def _reference_forward(x, params, eps):
    """Pure-JAX reference matching the PyTorch GaussianPolicy forward."""
    w1, b1, w2, b2, w3, b3 = params
    hp = jax.lax.Precision.HIGHEST
    h = jnp.tanh(jnp.dot(x, w1.T, precision=hp) + b1.T)
    h = jnp.tanh(jnp.dot(h, w2.T, precision=hp) + b2.T)
    mu = jnp.dot(h, w3.T, precision=hp) + b3.T
    std = jnp.ones_like(mu)
    pi = mu + std * eps
    return mu, std, pi


if __name__ == "__main__":
    key = jax.random.PRNGKey(0)
    k_param, k_x1, k_e1, k_x2, k_e2, k_x3, k_e3 = jax.random.split(key, 7)

    input_size, output_size, hidden_sizes = 16, 8, (64, 64)
    params = init_params(k_param, input_size, output_size, hidden_sizes)

    def run_and_check(kx, ke, batch):
        x = jax.random.normal(kx, (batch, input_size), jnp.float32)
        eps = jax.random.normal(ke, (batch, output_size), jnp.float32)
        mu, std, pi = gaussian_policy_forward(x, params, eps)
        jax.block_until_ready((mu, std, pi))
        mu_r, _, pi_r = _reference_forward(x, params, eps)
        assert mu.shape == (batch, output_size)
        assert std.shape == (batch, output_size)
        assert pi.shape == (batch, output_size)
        assert bool(jnp.allclose(mu, mu_r, atol=1e-4, rtol=1e-4))
        assert bool(jnp.allclose(std, 1.0))
        assert bool(jnp.allclose(pi, pi_r, atol=1e-4, rtol=1e-4))
        assert bool(jnp.allclose(pi - mu, eps, atol=5e-6))
        return x

    run_and_check(k_x1, k_e1, 8)        # tiny batch, single tile
    run_and_check(k_x2, k_e2, 10)       # batch not a multiple of 8/128 (padding path)
    x3 = run_and_check(k_x3, k_e3, 300)  # multi-tile grid (>= 2 steps, megacore-shardable)

    # Best-effort check of the in-kernel PRNG path (removes the eps HBM stream).
    # Guarded: pltpu.stateful_normal is not available on every jax version.
    if hasattr(pltpu, "stateful_normal"):
        try:
            mu_r, _, _ = _reference_forward(
                x3, params, jnp.zeros((x3.shape[0], output_size), jnp.float32))
            mu3, std3, pi3 = gaussian_policy_forward(x3, params, eps=None, seed=1234)
            jax.block_until_ready((mu3, std3, pi3))
            assert bool(jnp.allclose(mu3, mu_r, atol=1e-4, rtol=1e-4))
            assert bool(jnp.allclose(std3, 1.0))
            assert bool(jnp.all(jnp.isfinite(pi3)))
        except Exception:
            pass  # optional fast path only; host-eps path above is the validated one

    print("KERNEL_OK")
</pallas_src>

<mosaic_0001>
module attributes {stable_mosaic.version = 11 : i64} {
  func.func @_gaussian_policy_kernel_eps(%arg0: i32, %arg1: memref<128x16xf32, #tpu.memory_space<vmem>>, %arg2: memref<8x128xf32, #tpu.memory_space<vmem>>, %arg3: memref<64x16xf32, #tpu.memory_space<vmem>>, %arg4: memref<64x1xf32, #tpu.memory_space<vmem>>, %arg5: memref<64x64xf32, #tpu.memory_space<vmem>>, %arg6: memref<64x1xf32, #tpu.memory_space<vmem>>, %arg7: memref<8x64xf32, #tpu.memory_space<vmem>>, %arg8: memref<8x1xf32, #tpu.memory_space<vmem>>, %arg9: memref<16x128xf32, #tpu.memory_space<vmem>>) attributes {dimension_semantics = [#tpu.dimension_semantics<parallel>], iteration_bounds = array<i64: 1>, scalar_prefetch = 0 : i64, scratch_operands = 0 : i64, tpu.core_type = #tpu.core_type<tc>, window_params = [{transform_indices = @transform_0, window_bounds = array<i64: 128, 16>}, {transform_indices = @transform_1, window_bounds = array<i64: 8, 128>}, {pipeline_mode = #tpu.pipeline_mode<synchronous>, transform_indices = @transform_2, window_bounds = array<i64: 64, 16>}, {pipeline_mode = #tpu.pipeline_mode<synchronous>, transform_indices = @transform_3, window_bounds = array<i64: 64, 1>}, {pipeline_mode = #tpu.pipeline_mode<synchronous>, transform_indices = @transform_4, window_bounds = array<i64: 64, 64>}, {pipeline_mode = #tpu.pipeline_mode<synchronous>, transform_indices = @transform_5, window_bounds = array<i64: 64, 1>}, {pipeline_mode = #tpu.pipeline_mode<synchronous>, transform_indices = @transform_6, window_bounds = array<i64: 8, 64>}, {pipeline_mode = #tpu.pipeline_mode<synchronous>, transform_indices = @transform_7, window_bounds = array<i64: 8, 1>}, {transform_indices = @transform_8, window_bounds = array<i64: 16, 128>}]} {
    %c0 = arith.constant 0 : index
    %c0_0 = arith.constant 0 : index
    %0 = vector.load %arg1[%c0, %c0_0] : memref<128x16xf32, #tpu.memory_space<vmem>>, vector<128x16xf32>
    %c0_1 = arith.constant 0 : index
    %c0_2 = arith.constant 0 : index
    %1 = vector.load %arg3[%c0_1, %c0_2] : memref<64x16xf32, #tpu.memory_space<vmem>>, vector<64x16xf32>
    %cst = arith.constant dense<0.000000e+00> : vector<64x128xf32>
    %2 = tpu.matmul %1, %0, %cst {dimension_numbers = #tpu.dot_dimension_numbers<[1], [1], [0], [0], [0, 0, 1, 0], [], []>} : vector<64x16xf32>, vector<128x16xf32>, vector<64x128xf32> -> vector<64x128xf32>
    %c0_3 = arith.constant 0 : index
    %c0_4 = arith.constant 0 : index
    %3 = vector.load %arg4[%c0_3, %c0_4] : memref<64x1xf32, #tpu.memory_space<vmem>>, vector<64x1xf32>
    %4 = vector.broadcast %3 : vector<64x1xf32> to vector<64x128xf32>
    %5 = arith.addf %2, %4 : vector<64x128xf32>
    %6 = math.tanh %5 : vector<64x128xf32>
    %c0_5 = arith.constant 0 : index
    %c0_6 = arith.constant 0 : index
    %7 = vector.load %arg5[%c0_5, %c0_6] : memref<64x64xf32, #tpu.memory_space<vmem>>, vector<64x64xf32>
    %cst_7 = arith.constant dense<0.000000e+00> : vector<64x128xf32>
    %8 = tpu.matmul %7, %6, %cst_7 {dimension_numbers = #tpu.dot_dimension_numbers<[1], [0], [0], [1], [0, 0, 1, 1], [], []>} : vector<64x64xf32>, vector<64x128xf32>, vector<64x128xf32> -> vector<64x128xf32>
    %c0_8 = arith.constant 0 : index
    %c0_9 = arith.constant 0 : index
    %9 = vector.load %arg6[%c0_8, %c0_9] : memref<64x1xf32, #tpu.memory_space<vmem>>, vector<64x1xf32>
    %10 = vector.broadcast %9 : vector<64x1xf32> to vector<64x128xf32>
    %11 = arith.addf %8, %10 : vector<64x128xf32>
    %12 = math.tanh %11 : vector<64x128xf32>
    %c0_10 = arith.constant 0 : index
    %c0_11 = arith.constant 0 : index
    %13 = vector.load %arg7[%c0_10, %c0_11] : memref<8x64xf32, #tpu.memory_space<vmem>>, vector<8x64xf32>
    %cst_12 = arith.constant dense<0.000000e+00> : vector<8x128xf32>
    %14 = tpu.matmul %13, %12, %cst_12 {dimension_numbers = #tpu.dot_dimension_numbers<[1], [0], [0], [1], [0, 0, 1, 1], [], []>} : vector<8x64xf32>, vector<64x128xf32>, vector<8x128xf32> -> vector<8x128xf32>
    %c0_13 = arith.constant 0 : index
    %c0_14 = arith.constant 0 : index
    %15 = vector.load %arg8[%c0_13, %c0_14] : memref<8x1xf32, #tpu.memory_space<vmem>>, vector<8x1xf32>
    %16 = vector.broadcast %15 : vector<8x1xf32> to vector<8x128xf32>
    %17 = arith.addf %14, %16 : vector<8x128xf32>
    %c0_15 = arith.constant 0 : index
    %c0_16 = arith.constant 0 : index
    %18 = vector.load %arg9[%c0_15, %c0_16] : memref<16x128xf32, #tpu.memory_space<vmem>>, vector<8x128xf32>
    tpu.vector_store %arg9[%c0_15, %c0_16], %17 {strides = array<i32>} : memref<16x128xf32, #tpu.memory_space<vmem>>, vector<8x128xf32>,
    %c0_17 = arith.constant 0 : index
    %c0_18 = arith.constant 0 : index
    %19 = vector.load %arg2[%c0_17, %c0_18] : memref<8x128xf32, #tpu.memory_space<vmem>>, vector<8x128xf32>
    %20 = arith.addf %17, %19 : vector<8x128xf32>
    %c8 = arith.constant 8 : index
    %c0_19 = arith.constant 0 : index
    %21 = vector.load %arg9[%c8, %c0_19] : memref<16x128xf32, #tpu.memory_space<vmem>>, vector<8x128xf32>
    tpu.vector_store %arg9[%c8, %c0_19], %20 {strides = array<i32>} : memref<16x128xf32, #tpu.memory_space<vmem>>, vector<8x128xf32>,
    return
  }
  func.func @transform_0(%arg0: i32) -> (i32, i32) {
    %c0_i32 = arith.constant 0 : i32
    %c0_i32_0 = arith.constant 0 : i32
    return %arg0, %c0_i32 : i32, i32
  }
  func.func @transform_1(%arg0: i32) -> (i32, i32) {
    %c0_i32 = arith.constant 0 : i32
    %c0_i32_0 = arith.constant 0 : i32
    return %c0_i32, %arg0 : i32, i32
  }
  func.func @transform_2(%arg0: i32) -> (i32, i32) {
    %c0_i32 = arith.constant 0 : i32
    %c0_i32_0 = arith.constant 0 : i32
    %c0_i32_1 = arith.constant 0 : i32
    return %c0_i32, %c0_i32_0 : i32, i32
  }
  func.func @transform_3(%arg0: i32) -> (i32, i32) {
    %c0_i32 = arith.constant 0 : i32
    %c0_i32_0 = arith.constant 0 : i32
    %c0_i32_1 = arith.constant 0 : i32
    return %c0_i32, %c0_i32_0 : i32, i32
  }
  func.func @transform_4(%arg0: i32) -> (i32, i32) {
    %c0_i32 = arith.constant 0 : i32
    %c0_i32_0 = arith.constant 0 : i32
    %c0_i32_1 = arith.constant 0 : i32
    return %c0_i32, %c0_i32_0 : i32, i32
  }
  func.func @transform_5(%arg0: i32) -> (i32, i32) {
    %c0_i32 = arith.constant 0 : i32
    %c0_i32_0 = arith.constant 0 : i32
    %c0_i32_1 = arith.constant 0 : i32
    return %c0_i32, %c0_i32_0 : i32, i32
  }
  func.func @transform_6(%arg0: i32) -> (i32, i32) {
    %c0_i32 = arith.constant 0 : i32
    %c0_i32_0 = arith.constant 0 : i32
    %c0_i32_1 = arith.constant 0 : i32
    return %c0_i32, %c0_i32_0 : i32, i32
  }
  func.func @transform_7(%arg0: i32) -> (i32, i32) {
    %c0_i32 = arith.constant 0 : i32
    %c0_i32_0 = arith.constant 0 : i32
    %c0_i32_1 = arith.constant 0 : i32
    return %c0_i32, %c0_i32_0 : i32, i32
  }
  func.func @transform_8(%arg0: i32) -> (i32, i32) {
    %c0_i32 = arith.constant 0 : i32
    %c0_i32_0 = arith.constant 0 : i32
    return %c0_i32, %arg0 : i32, i32
  }
}

</mosaic_0001>

<bundles_post_ra>
// kernel: tpu_custom_call.1
= control target key start
LH: loop header
LB: loop body
LE: loop exit
PB: predicated region body
PF: predicated region fallthrough
CT: control target
= control target key end

     0   :  { %vm102_vm0 = vcmask 130048   ;;  %v896_v6 = vmov 0   ;;  %s1168_s0 = inlined_call_operand.vmem [shape: f32[128,16], index: 0, kind: input, shape index: {}]   ;;  %s1169_s1 = inlined_call_operand.vmem [shape: f32[8,128], index: 1, kind: input, shape index: {}]   ;;  %s1170_s2 = inlined_call_operand.vmem [shape: f32[64,16], index: 2, kind: input, shape index: {}]   ;;  %s1171_s3 = inlined_call_operand.vmem [shape: f32[64,1], index: 3, kind: input, shape index: {}]   ;;  %s1172_s4 = inlined_call_operand.vmem [shape: f32[64,64], index: 4, kind: input, shape index: {}]   ;;  %s1173_s5 = inlined_call_operand.vmem [shape: f32[64,1], index: 5, kind: input, shape index: {}]   ;;  %s1174_s6 = inlined_call_operand.vmem [shape: f32[8,64], index: 6, kind: input, shape index: {}]   ;;  %s1175_s7 = inlined_call_operand.vmem [shape: f32[8,1], index: 7, kind: input, shape index: {}]   ;;  %s1176_s8 = inlined_call_operand.hbm [shape: f32[16,128], index: 8, kind: output, shape index: {}]  }
   0x1   :  { %v30_v0 = vld [vmem:[%s1168_s0] sm:$0xff]  ;;  %v31_v1 = vld [vmem:[%s1168_s0 + $0x8] sm:$0xff]  ;;  %v32_v2 = vld [vmem:[%s1168_s0 + $0x10] sm:$0xff]  ;;  %838 = vset.pattern.permute.xlu0 %v896_v6  ;;  %839 = vset.pattern.permute.xlu1 %v896_v6 }
   0x2   :  { %v755_v3 = vpack.c.bf16 %v31_v1, %v30_v0  ;;  %vm959_vm1 = vmpackc.low %vm102_vm0, %vm102_vm0  ;;  %v33_v5 = vld [vmem:[%s1168_s0 + $0x18] sm:$0xff]  ;;  %v46_v8 = vld [vmem:[%s1170_s2] sm:$0xff] }
   0x3   :  { %v761_v7 = vpack.c.bf16 %v33_v5, %v32_v2  ;;  %v34_v9 = vld [vmem:[%s1168_s0 + $0x20] sm:$0xff]  ;;  %v35_v10 = vld [vmem:[%s1168_s0 + $0x28] sm:$0xff]  ;;  %696 = vmatprep.mubr.msk.f32.mxu0 %vm102_vm0, %v46_v8  ;;  %v56_v13 = vld [vmem:[%s1171_s3 + $0x10] sm:$0xff] }
   0x4   :  { %757 = vmatprep.subr.msk.bf16.mxu0 %vm959_vm1, %v755_v3  ;;  %v54_v11 = vld [vmem:[%s1171_s3] sm:$0xff]  ;;  %v767_v12 = vpack.c.bf16 %v35_v10, %v34_v9  ;;  %v55_v14 = vld [vmem:[%s1171_s3 + $0x8] sm:$0xff]  ;;  %74 = vperm.xlu1 %839, %v56_v13   ;;  %v57_v15 = vld [vmem:[%s1171_s3 + $0x18] sm:$0xff] }
   0x5   :  { %760 = vmatpush3.bf16.xpose.msk.msra.mxu0 %vm959_vm1, %v755_v3  ;;  %64 = vperm.xlu0 %838, %v54_v11   ;;  %v36_v16 = vld [vmem:[%s1168_s0 + $0x30] sm:$0xff]  ;;  %v37_v17 = vld [vmem:[%s1168_s0 + $0x38] sm:$0xff]  ;;  %v58_v18 = vld [vmem:[%s1171_s3 + $0x20] sm:$0xff] }
   0x6   :  { %763 = vmatprep.subr.msk.bf16.mxu0 %vm959_vm1, %v761_v7 }
   0x8   :  { %79 = vperm.xlu1 %839, %v57_v15  }
   0x9   :  { %69 = vperm.xlu0 %838, %v55_v14  }
   0xd   :  { %766 = vmatpush3.bf16.xpose.msk.msra.mxu0 %vm959_vm1, %v761_v7 }
   0xe   :  { %769 = vmatprep.subr.msk.bf16.mxu0 %vm959_vm1, %v767_v12 }
   0xf   :  { %13 = vsyncpa [#allocation3], 0  ;;  %v59_v19 = vld [vmem:[%s1171_s3 + $0x28] sm:$0xff]  ;;  %v773_v20 = vpack.c.bf16 %v37_v17, %v36_v16  ;;  %84 = vperm.xlu0 %838, %v58_v18   ;;  %v60_v21 = vld [vmem:[%s1171_s3 + $0x30] sm:$0xff]  ;;  %vm344_vm2 = vcmask 523264   ;;  %vm898_vm3 = vmmov 0  }
  0x10   :  { %89 = vperm.xlu1 %839, %v59_v19   ;;  %v61_v22 = vld [vmem:[%s1171_s3 + $0x38] sm:$0xff]  ;;  %v38_v23 = vld [vmem:[%s1168_s0 + $0x40] sm:$0xff]  ;;  %v39_v24 = vld [vmem:[%s1168_s0 + $0x48] sm:$0xff] }
  0x11   :  { %v296_v25 = vld [vmem:[%s1173_s5] sm:$0xff]  ;;  %v297_v26 = vld [vmem:[%s1173_s5 + $0x8] sm:$0xff]  ;;  %v779_v27 = vpack.c.bf16 %v39_v24, %v38_v23  ;;  %v298_v28 = vld [vmem:[%s1173_s5 + $0x10] sm:$0xff] }
  0x12   :  { %v299_v29 = vld [vmem:[%s1173_s5 + $0x18] sm:$0xff]  ;;  %v40_v30 = vld [vmem:[%s1168_s0 + $0x50] sm:$0xff]  ;;  %v300_v32 = vld [vmem:[%s1173_s5 + $0x20] sm:$0xff] }
  0x13   :  { %94 = vperm.xlu0 %838, %v60_v21   ;;  %v41_v31 = vld [vmem:[%s1168_s0 + $0x58] sm:$0xff]  ;;  %v301_v33 = vld [vmem:[%s1173_s5 + $0x28] sm:$0xff]  ;;  %v302_v35 = vld [vmem:[%s1173_s5 + $0x30] sm:$0xff] }
  0x14   :  { %99 = vperm.xlu1 %839, %v61_v22   ;;  %v785_v34 = vpack.c.bf16 %v41_v31, %v40_v30  ;;  %v303_v36 = vld [vmem:[%s1173_s5 + $0x38] sm:$0xff]  ;;  %v42_v37 = vld [vmem:[%s1168_s0 + $0x60] sm:$0xff]  ;;  %v43_v38 = vld [vmem:[%s1168_s0 + $0x68] sm:$0xff]  ;;  %v897_v31 = vmov 0.0|0.0  }
  0x15   :  { %772 = vmatpush3.bf16.xpose.msk.msra.mxu0 %vm959_vm1, %v767_v12  ;;  %v483_v39 = vld [vmem:[%s1175_s7] sm:$0xff]  ;;  %v791_v40 = vpack.c.bf16 %v43_v38, %v42_v37  ;;  %v44_v41 = vld [vmem:[%s1168_s0 + $0x70] sm:$0xff]  ;;  %v45_v42 = vld [vmem:[%s1168_s0 + $0x78] sm:$0xff]  ;;  %s900_s0 = smov [#allocation2]  }
  0x16   :  { %775 = vmatprep.subr.msk.bf16.mxu0 %vm959_vm1, %v773_v20  ;;  %v797_v43 = vpack.c.bf16 %v45_v42, %v44_v41  ;;  %v47_v44 = vld [vmem:[%s1170_s2 + $0x8] sm:$0xff]  ;;  %v48_v45 = vld [vmem:[%s1170_s2 + $0x10] sm:$0xff]  ;;  %v49_v46 = vld [vmem:[%s1170_s2 + $0x18] sm:$0xff]  ;;  %s571_s29 = sshll.u32 %s900_s0, 4  ;;  %s572_s29 = int_to_ptr.vmem [resolvable:$true] %s571_s29 }
  0x17   :  { %306 = vperm.xlu0 %838, %v296_v25   ;;  %v50_v47 = vld [vmem:[%s1170_s2 + $0x20] sm:$0xff]  ;;  %v51_v48 = vld [vmem:[%s1170_s2 + $0x28] sm:$0xff]  ;;  %v52_v49 = vld [vmem:[%s1170_s2 + $0x30] sm:$0xff]  ;;  %s872_s10 = scalar_lea.vmem %s572_s29, 256  ;;  %p877_p1 = scmp.lt.s32.totalorder %s572_s29, %s572_s29 }
  0x18   :  { %311 = vperm.xlu1 %839, %v297_v26   ;;  %v53_v50 = vld [vmem:[%s1170_s2 + $0x38] sm:$0xff]  ;;  %v288_v51 = vld [vmem:[%s1172_s4] sm:$0xff]  ;;  %v289_v24 = vld [vmem:[%s1172_s4 + $0x8] sm:$0xff]  ;;  %p873_p0 = scmp.ne.s32.totalorder %s572_s29, %s872_s10  ;;  %p878_p2 = scmp.lt.s32.totalorder %s872_s10, %s872_s10 }
  0x19   :  { %724 = vmatprep.mubr.msk.f32.mxu1 %vm344_vm2, %v288_v51  ;;  %v290_v25 = vld [vmem:[%s1172_s4 + $0x10] sm:$0xff]  ;;  %v291_v26 = vld [vmem:[%s1172_s4 + $0x18] sm:$0xff] }
  0x1a   :  { %v295_v30 = vld [vmem:[%s1172_s4 + $0x38] sm:$0xff]  ;;  %p879_p3 = por %p878_p2, %p877_p1 }
  0x1b   :  { %316 = vperm.xlu0 %838, %v298_v28   ;;  %v293_v28 = vld [vmem:[%s1172_s4 + $0x28] sm:$0xff] }
  0x1c   :  { %321 = vperm.xlu1 %839, %v299_v29   ;;  %v294_v29 = vld [vmem:[%s1172_s4 + $0x30] sm:$0xff]  ;;  %p880_p4 = pnand %p879_p3, %p873_p0 }
  0x1d   :  { %778 = vmatpush3.bf16.xpose.msk.msra.mxu0 %vm959_vm1, %v773_v20 }
  0x1e   :  { %781 = vmatprep.subr.msk.bf16.mxu0 %vm959_vm1, %v779_v27 }
  0x1f   :  { %326 = vperm.xlu0 %838, %v300_v32   ;;  %v899_v32 = vmov 0.0  }
  0x20   :  { %331 = vperm.xlu1 %839, %v301_v33  }
  0x23   :  { %336 = vperm.xlu0 %838, %v302_v35  }
  0x24   :  { %341 = vperm.xlu1 %839, %v303_v36  }
  0x25   :  { %784 = vmatpush3.bf16.xpose.msk.msra.mxu0 %vm959_vm1, %v779_v27  ;;  %v292_v27 = vld [vmem:[%s1172_s4 + $0x20] sm:$0xff] }
  0x26   :  { %787 = vmatprep.subr.msk.bf16.mxu0 %vm959_vm1, %v785_v34 }
  0x27   :  { %486 = vperm.xlu0 %838, %v483_v39  }
  0x2d   :  { %790 = vmatpush3.bf16.xpose.msk.msra.mxu0 %vm959_vm1, %v785_v34 }
  0x2e   :  { %793 = vmatprep.subr.msk.bf16.mxu0 %vm959_vm1, %v791_v40 }
  0x35   :  { %796 = vmatpush3.bf16.xpose.msk.msra.mxu0 %vm959_vm1, %v791_v40 }
  0x36   :  { %799 = vmatprep.subr.msk.bf16.mxu0 %vm959_vm1, %v797_v43 }
  0x3d   :  { %802 = vmatpush3.bf16.xpose.msk.msra.mxu0 %vm959_vm1, %v797_v43 }
  0x44   :  { %697 = vmatmul.mubr.msk.f32.vlgmr.msra.gmra.mrb[0].mxu0 %vm102_vm0, %v47_v44 }
  0x45   :  { %699 = vmatprep.mubr.msk.f32.mxu0 %vm102_vm0, %v48_v45 }
  0x48   :  { %700 = vmatmul.mubr.msk.f32.gmra.mrb[2].mxu0 %vm102_vm0, %v49_v46 }
  0x49   :  { %702 = vmatprep.mubr.msk.f32.mxu0 %vm102_vm0, %v50_v47 }
  0x4c   :  { %703 = vmatmul.mubr.msk.f32.gmra.mrb[4].mxu0 %vm102_vm0, %v51_v48 }
  0x4d   :  { %705 = vmatprep.mubr.msk.f32.mxu0 %vm102_vm0, %v52_v49 }
  0x50   :  { %706 = vmatmul.mubr.msk.f32.gmra.mrb[6].mxu0 %vm102_vm0, %v53_v50 }
  0x83   :  { %v75_v53 = vpop.permute.xlu1 %74 }
  0x84   :  { %v65_v52 = vpop.permute.xlu0 %64 }
  0x87   :  { %v80_v55 = vpop.permute.xlu1 %79 }
  0x88   :  { %v70_v54 = vpop.permute.xlu0 %69 }
  0x8e   :  { %v85_v1 = vpop.permute.xlu0 %84 }
  0x8f   :  { %v90_v63 = vpop.permute.xlu1 %89 }
  0x92   :  { %v95_v9 = vpop.permute.xlu0 %94 }
  0x93   :  { %v100_v6 = vpop.permute.xlu1 %99 }
  0x96   :  { %v307_v34 = vpop.permute.xlu0 %306 }
  0x97   :  { %v312_v33 = vpop.permute.xlu1 %311 }
  0x9a   :  { %v317_v37 = vpop.permute.xlu0 %316 }
  0x9b   :  { %v322_v35 = vpop.permute.xlu1 %321 }
  0x9e   :  { %v327_v46 = vpop.permute.xlu0 %326 }
  0x9f   :  { %v332_v44 = vpop.permute.xlu1 %331 }
  0xa3   :  { %v342_v51 = vpop.permute.xlu1 %341 }
 0x117   :  { %v698_v56 = vpop.f32.mrb[0].mxu0 }
 0x118   :  { %v247_v57 = vadd.f32 %v698_v56, %v70_v54  ;;  %v241_v58 = vpop.f32.mrb[1].mxu0  ;;  %v337_v54 = vpop.permute.xlu0 %336 }
 0x119   :  { %v242_v59 = vadd.f32 %v241_v58, %v65_v52 }
 0x11a   :  { %840 = vtanh.f32 %v247_v57 }
 0x11b   :  { %842 = vtanh.f32 %v242_v59  ;;  %v701_v60 = vpop.f32.mrb[2].mxu0 }
 0x11c   :  { %v257_v61 = vadd.f32 %v701_v60, %v80_v55  ;;  %v251_v62 = vpop.f32.mrb[3].mxu0 }
 0x11d   :  { %v252_v0 = vadd.f32 %v251_v62, %v75_v53 }
 0x11e   :  { %844 = vtanh.f32 %v257_v61 }
 0x11f   :  { %846 = vtanh.f32 %v252_v0  ;;  %v704_v2 = vpop.f32.mrb[4].mxu0 }
 0x120   :  { %v267_v3 = vadd.f32 %v704_v2, %v90_v63  ;;  %v261_v4 = vpop.f32.mrb[5].mxu0 }
 0x121   :  { %v262_v5 = vadd.f32 %v261_v4, %v85_v1 }
 0x122   :  { %848 = vtanh.f32 %v267_v3 }
 0x123   :  { %850 = vtanh.f32 %v262_v5  ;;  %v707_v7 = vpop.f32.mrb[6].mxu0  ;;  %v482_v5 = vld [vmem:[%s1174_s6] sm:$0xff] }
 0x124   :  { %v841_v8 = vpop.eup %840  ;;  %v277_v10 = vadd.f32 %v707_v7, %v100_v6  ;;  %v271_v11 = vpop.f32.mrb[7].mxu0 }
 0x125   :  { %v843_v12 = vpop.eup %842  ;;  %v272_v13 = vadd.f32 %v271_v11, %v95_v9  ;;  %v487_v6 = vpop.permute.xlu0 %486 }
 0x126   :  { %852 = vtanh.f32 %v277_v10  ;;  %v803_v14 = vpack.c.bf16 %v841_v8, %v843_v12  ;;  %v563_v8 = vld [vmem:[%s1169_s1] sm:$0xff] }
 0x127   :  { %854 = vtanh.f32 %v272_v13 }
 0x128   :  { %v845_v15 = vpop.eup %844  ;;  %804 = vmatprep.subr.bf16.mxu1 %v803_v14 }
 0x129   :  { %v847_v16 = vpop.eup %846  ;;  %806 = vmatpush3.bf16.msra.mxu1 %v803_v14 }
 0x12a   :  { %v807_v17 = vpack.c.bf16 %v845_v15, %v847_v16 }
 0x12c   :  { %v849_v18 = vpop.eup %848  ;;  %808 = vmatprep.subr.bf16.mxu1 %v807_v17 }
 0x12d   :  { %v851_v19 = vpop.eup %850  ;;  %810 = vmatpush3.bf16.msra.mxu1 %v807_v17 }
 0x12e   :  { %v811_v20 = vpack.c.bf16 %v849_v18, %v851_v19 }
 0x130   :  { %v853_v21 = vpop.eup %852  ;;  %812 = vmatprep.subr.bf16.mxu1 %v811_v20 }
 0x131   :  { %v855_v22 = vpop.eup %854  ;;  %814 = vmatpush3.bf16.msra.mxu1 %v811_v20 }
 0x132   :  { %v815_v23 = vpack.c.bf16 %v853_v21, %v855_v22 }
 0x134   :  { %816 = vmatprep.subr.bf16.mxu1 %v815_v23 }
 0x135   :  { %818 = vmatpush3.bf16.msra.mxu1 %v815_v23 }
 0x136   :  { %819 = vmatprep.subr.bf16.mxu1 %v897_v31 }
 0x138   :  { %725 = vmatmul.mubr.msk.f32.vlgmr.msra.gmra.mrb[0].mxu1 %vm344_vm2, %v289_v24 }
 0x139   :  { %727 = vmatprep.mubr.msk.f32.mxu1 %vm344_vm2, %v290_v25 }
 0x13c   :  { %728 = vmatmul.mubr.msk.f32.gmra.mrb[2].mxu1 %vm344_vm2, %v291_v26 }
 0x13d   :  { %730 = vmatprep.mubr.msk.f32.mxu1 %vm344_vm2, %v292_v27 }
 0x140   :  { %731 = vmatmul.mubr.msk.f32.gmra.mrb[4].mxu1 %vm344_vm2, %v293_v28 }
 0x141   :  { %733 = vmatprep.mubr.msk.f32.mxu1 %vm344_vm2, %v294_v29 }
 0x144   :  { %734 = vmatmul.mubr.msk.f32.gmra.mrb[6].mxu1 %vm344_vm2, %v295_v30 }
 0x145   :  { %752 = vmatprep.mubr.msk.f32.mxu1 %vm898_vm3, %v899_v32 }
 0x20b   :  { %v726_v36 = vpop.f32.mrb[0].mxu1 }
 0x20c   :  { %v441_v38 = vadd.f32 %v726_v36, %v312_v33  ;;  %v435_v39 = vpop.f32.mrb[1].mxu1 }
 0x20d   :  { %v436_v40 = vadd.f32 %v435_v39, %v307_v34 }
 0x20e   :  { %856 = vtanh.f32 %v441_v38 }
 0x20f   :  { %858 = vtanh.f32 %v436_v40  ;;  %v729_v41 = vpop.f32.mrb[2].mxu1 }
 0x210   :  { %v451_v42 = vadd.f32 %v729_v41, %v322_v35  ;;  %v445_v43 = vpop.f32.mrb[3].mxu1 }
 0x211   :  { %v446_v45 = vadd.f32 %v445_v43, %v317_v37 }
 0x212   :  { %860 = vtanh.f32 %v451_v42 }
 0x213   :  { %862 = vtanh.f32 %v446_v45  ;;  %v732_v47 = vpop.f32.mrb[4].mxu1 }
 0x214   :  { %v461_v48 = vadd.f32 %v732_v47, %v332_v44  ;;  %v455_v49 = vpop.f32.mrb[5].mxu1 }
 0x215   :  { %v456_v50 = vadd.f32 %v455_v49, %v327_v46 }
 0x216   :  { %864 = vtanh.f32 %v461_v48 }
 0x217   :  { %866 = vtanh.f32 %v456_v50  ;;  %v735_v52 = vpop.f32.mrb[6].mxu1 }
 0x218   :  { %v857_v53 = vpop.eup %856  ;;  %v471_v55 = vadd.f32 %v735_v52, %v342_v51  ;;  %v465_v56 = vpop.f32.mrb[7].mxu1 }
 0x219   :  { %v859_v57 = vpop.eup %858  ;;  %v466_v58 = vadd.f32 %v465_v56, %v337_v54 }
 0x21a   :  { %868 = vtanh.f32 %v471_v55  ;;  %v820_v59 = vpack.c.bf16 %v857_v53, %v859_v57 }
 0x21b   :  { %870 = vtanh.f32 %v466_v58 }
 0x21c   :  { %v861_v60 = vpop.eup %860  ;;  %821 = vmatpush3.bf16.msra.mxu1 %v820_v59 }
 0x21d   :  { %v863_v61 = vpop.eup %862  ;;  %822 = vmatprep.subr.bf16.mxu1 %v897_v31 }
 0x21e   :  { %v823_v62 = vpack.c.bf16 %v861_v60, %v863_v61 }
 0x220   :  { %v865_v63 = vpop.eup %864  ;;  %824 = vmatpush3.bf16.msra.mxu1 %v823_v62 }
 0x221   :  { %v867_v0 = vpop.eup %866  ;;  %825 = vmatprep.subr.bf16.mxu1 %v897_v31 }
 0x222   :  { %v826_v1 = vpack.c.bf16 %v865_v63, %v867_v0 }
 0x224   :  { %v869_v2 = vpop.eup %868  ;;  %827 = vmatpush3.bf16.msra.mxu1 %v826_v1 }
 0x225   :  { %v871_v3 = vpop.eup %870  ;;  %828 = vmatprep.subr.bf16.mxu1 %v897_v31 }
 0x226   :  { %v829_v4 = vpack.c.bf16 %v869_v2, %v871_v3 }
 0x228   :  { %830 = vmatpush3.bf16.msra.mxu1 %v829_v4 }
 0x22b   :  { %753 = vmatmul.mubr.msk.f32.vlgmr.msra.gmra.mrb[8].mxu1 %vm344_vm2, %v482_v5 }
 0x2fe   :  { %v558_v7 = vpop.f32.mrb[8].mxu1 }
 0x2ff   :  { %v559_v9 = vadd.f32 %v558_v7, %v487_v6  ;;  %v754_v10 = vpop.f32.mrb[9].mxu1 }
 0x301   :  { %562 = vst [vmem:[#allocation2] sm:$0xff] %v559_v9  ;;  %v564_v11 = vadd.f32 %v563_v8, %v559_v9 }
 0x303   :  { %565 = vst [vmem:[#allocation2 + $0x8] sm:$0xff] %v564_v11 }
 0x304   :  { %883 = shalt.err (!%p880_p4)
}
 0x305   :  { %s884_s12 = scalar_lea.hbm %s1176_s8, 256 }
 0x306   :  { %p885_p5 = scmp.ne.s32.totalorder %s1176_s8, %s884_s12  ;;  %p888_p6 = scmp.lt.u32.totalorder %s884_s12, %s1176_s8 }
 0x308   :  { %p890_p7 = pnand %p888_p6, %p885_p5 }
 0x30a   :  { %893 = shalt.err (!%p890_p7)
}
 0x30b   :  { %s901_s16 = smov 128   ;;  %s902_s17 = smov 8  }
 0x30c   :  { %577 = dma.vmem_to_hbm [thread:$0]  %s572_s29, 256, %s1176_s8, [#allocation3], %s901_s16, %s901_s16, %s902_s17  }
 0x30d   :  { %894 = dma.done.wait [#allocation3], 256  }
 0x30e   :  { %895 = vsyncadd [#allocation3], 4294967040 }
 0x30f   :  { %581 = vsyncpa [#allocation3], 1 }

</bundles_post_ra>
